<compile_context>
chip_gen: v6e
topology: v6e:2x2x1
jax: 0.10.0
libtpu: 0.0.40
codegen_flags: <defaults>
</compile_context>

<pallas_src>
import functools

import jax
import jax.numpy as jnp
from jax.experimental import pallas as pl
from jax.experimental.pallas import tpu as pltpu

P_CONST = 0.0                      # stand-in for the undefined self.p
_SCALE = 1.0 / (1.0 - P_CONST)     # == 1.0 -> multiply skipped in the kernel


def _round_up(n, m):
    return ((n + m - 1) // m) * m


def hnn_kernel(xt_ref, w1_ref, b1_ref, w2_ref, b2_ref, w3_ref, b3_ref, o_ref):
    """Fused 3-layer MLP on one batch tile, batch-on-lanes layout.

    xt_ref: (D, bb)  x tile, batch on the lane axis, MXU-operand dtype
    w1_ref: (H, D), w2_ref: (H, H), w3_ref: (1, H)  -- native PyTorch (out, in)
    b1_ref, b2_ref: (H, 1) f32 columns (broadcast along lanes)
    b3_ref: (1,) f32 scalar in SMEM
    o_ref : (1, bb)  lane-dense output row
    """
    op_dtype = w1_ref.dtype
    xt = xt_ref[...]                                                  # (D, bb)
    h1 = jnp.tanh(
        jnp.dot(w1_ref[...], xt, preferred_element_type=jnp.float32)
        + b1_ref[...])                                                # (H, bb) f32
    h2 = jnp.tanh(
        jnp.dot(w2_ref[...], h1.astype(op_dtype),
                preferred_element_type=jnp.float32)
        + b2_ref[...])                                                # (H, bb) f32
    # Final Linear(H, 1): contract H (sublanes) on the MXU -> lane-dense (1, bb).
    h3 = jnp.dot(w3_ref[...], h2.astype(op_dtype),
                 preferred_element_type=jnp.float32) + b3_ref[0]      # (1, bb)
    if _SCALE != 1.0:   # p == 0 -> identity scale; keep the store path clean
        h3 = h3 * _SCALE
    o_ref[...] = h3.astype(o_ref.dtype)


@functools.partial(jax.jit, static_argnames=("max_block_b", "vmem_budget_bytes",
                                              "single_buffer_weights"))
def hnn_forward(x, w1, b1, w2, b2, w3, b3, *, max_block_b=4096,
                vmem_budget_bytes=8 << 20, single_buffer_weights=True):
    """H(x) = seq(x) / (1 - p) for x of shape (B, input_dim); returns (B, 1).

    Weights are taken in native PyTorch layout: w1 (H, D), w2 (H, H), w3 (1, H).
    The MXU-operand dtype is the weights' at-rest dtype (store them as bf16 to
    get the bf16 matmul path on v5e/v6e/v7x); x is cast to it fused with the
    layout transpose, while biases / accumulation / tanh stay f32.
    """
    B, D = x.shape
    H = w1.shape[0]
    out_dtype = x.dtype
    op_dtype = w1.dtype
    op_bytes = jnp.dtype(op_dtype).itemsize

    # Accept PyTorch-shaped biases / w3; reshapes are on tiny arrays only.
    b1 = b1.reshape(H, 1).astype(jnp.float32)
    b2 = b2.reshape(H, 1).astype(jnp.float32)
    w3 = w3.reshape(1, H)
    b3 = b3.reshape(1).astype(jnp.float32)

    # ---- batch-tile selection (lane axis, multiple of 128 when tiling) -----
    # per-batch-column VMEM cost of one grid step:
    #   x tile (double-buffered) + (1, bb) out tile (8-sublane padded,
    #   double-buffered) + h1/h2 f32 intermediates.
    per_col = 2 * D * op_bytes + 2 * 8 * 4 + 2 * H * 4
    bb_cap = max(128, min(max_block_b,
                          (vmem_budget_bytes // per_col) // 128 * 128))
    if B < 128:
        # Single tiny block: block_shape == full array dims (BlockSpec
        # exemption); masked stores are irrelevant at this size.
        bb = B
    else:
        # Cap at ceil(B/2) rounded to 128 lanes -> >= 2 parallel blocks so the
        # grid shards across both TensorCores on v7x; bb stays a multiple of 128
        # so the (1, bb) output row keeps unmasked lane-dense stores.
        bb = max(128, min(bb_cap, _round_up(pl.cdiv(B, 2), 128)))
    n_blocks = pl.cdiv(B, bb)

    # ---- explicit VMEM budget (v7x: 64 MiB physical, 32 MiB scoped default) --
    weight_bytes = ((w1.size + w2.size + w3.size) * op_bytes
                    + (b1.size + b2.size) * 4)
    vmem_need = bb * per_col + (1 if single_buffer_weights else 2) * weight_bytes
    vmem_limit = int(min(48 << 20, max(4 * vmem_need, 16 << 20)))

    # The only wrapper op touching x: layout transpose to (D, B) (batch on
    # lanes), with the operand-dtype cast fused into the same XLA pass.
    # No jnp.pad: the ragged tail is handled by Pallas partial blocks.
    xT = x.T
    if op_dtype != x.dtype:
        xT = xT.astype(op_dtype)

    const_map = lambda i: (0, 0)   # weights / biases are not tiled over the grid
    if single_buffer_weights:
        # Constant index map -> DMA'd once; Buffered(1) releases the 2nd buffer
        # (matters once hidden_dim grows; W2 alone is 2*H*H*bytes otherwise).
        const_spec = lambda shape: pl.BlockSpec(shape, const_map,
                                                pipeline_mode=pl.Buffered(1))
    else:
        const_spec = lambda shape: pl.BlockSpec(shape, const_map)

    cost = pl.CostEstimate(
        flops=2 * B * (H * D + H * H + H),
        transcendentals=2 * B * H,
        bytes_accessed=int(xT.size * op_bytes
                           + B * jnp.dtype(out_dtype).itemsize
                           + weight_bytes + 4),
    )

    out_row = pl.pallas_call(
        hnn_kernel,
        out_shape=jax.ShapeDtypeStruct((1, B), out_dtype),
        grid_spec=pltpu.PrefetchScalarGridSpec(
            num_scalar_prefetch=0,
            grid=(n_blocks,),
            in_specs=[
                pl.BlockSpec((D, bb), lambda i: (0, i)),             # x tile
                const_spec((H, D)),                                  # W1 (out,in)
                const_spec((H, 1)),                                  # b1 column
                const_spec((H, H)),                                  # W2 (out,in)
                const_spec((H, 1)),                                  # b2 column
                const_spec((1, H)),                                  # W3 (1, H)
                pl.BlockSpec(memory_space=pltpu.MemorySpace.SMEM),   # b3 scalar
            ],
            out_specs=pl.BlockSpec((1, bb), lambda i: (0, i)),
        ),
        compiler_params=pltpu.CompilerParams(
            dimension_semantics=("parallel",),
            vmem_limit_bytes=vmem_limit,
        ),
        cost_estimate=cost,
    )(xT, w1, b1, w2, b2, w3, b3)

    # (1, B) row -> module's (B, 1) column; identical element order, cheap.
    return out_row.reshape(B, 1)


def init_params(key, input_dim, hidden_dim, weight_dtype=jnp.float32):
    """U(-1/sqrt(fan_in), 1/sqrt(fan_in)) init, mimicking torch.nn.Linear.

    Weights are returned in native PyTorch (out_features, in_features) layout;
    biases as f32 columns. Pass weight_dtype=jnp.bfloat16 for bf16-at-rest
    MXU operands (works on v5e/v6e/v7x)."""
    ks = jax.random.split(key, 6)

    def uniform(k, shape, fan_in, dtype):
        bound = 1.0 / float(fan_in) ** 0.5
        return jax.random.uniform(k, shape, jnp.float32, -bound, bound).astype(dtype)

    w1 = uniform(ks[0], (hidden_dim, input_dim), input_dim, weight_dtype)
    b1 = uniform(ks[1], (hidden_dim, 1), input_dim, jnp.float32)
    w2 = uniform(ks[2], (hidden_dim, hidden_dim), hidden_dim, weight_dtype)
    b2 = uniform(ks[3], (hidden_dim, 1), hidden_dim, jnp.float32)
    w3 = uniform(ks[4], (1, hidden_dim), hidden_dim, weight_dtype)
    b3 = uniform(ks[5], (1,), hidden_dim, jnp.float32)
    return w1, b1, w2, b2, w3, b3


def hnn_reference(x, w1, b1, w2, b2, w3, b3):
    """Pure-JAX reference with the same dtype policy as the kernel."""
    op = w1.dtype
    h1 = jnp.tanh(jnp.dot(x.astype(op), w1.T,
                          preferred_element_type=jnp.float32) + b1.reshape(1, -1))
    h2 = jnp.tanh(jnp.dot(h1.astype(op), w2.T,
                          preferred_element_type=jnp.float32) + b2.reshape(1, -1))
    h3 = jnp.dot(h2.astype(op), w3.reshape(1, -1).T,
                 preferred_element_type=jnp.float32) + b3.reshape(1, 1)
    return (h3 * _SCALE).astype(x.dtype)


if __name__ == "__main__":
    # Small shapes consistent with the module (input_dim even: d = input_dim // 2).
    input_dim, hidden_dim = 8, 32
    key = jax.random.PRNGKey(0)
    kx1, kx2, kp = jax.random.split(key, 3)
    params = init_params(kp, input_dim, hidden_dim)
    w1, b1, w2, b2, w3, b3 = params

    # 1) small batch: single block (full-array-dim BlockSpec path). This first
    #    call also probes pipeline_mode=pl.Buffered(1) support on this JAX
    #    build; fall back to default double-buffered constants if rejected.
    x_small = jax.random.normal(kx1, (8, input_dim), dtype=jnp.float32)
    sb = True
    try:
        out = jax.block_until_ready(
            hnn_forward(x_small, *params, single_buffer_weights=True))
    except Exception:   # version robustness for pl.Buffered on the Mosaic path
        sb = False
        out = jax.block_until_ready(
            hnn_forward(x_small, *params, single_buffer_weights=False))
    ref = hnn_reference(x_small, *params)
    assert out.shape == (8, 1)
    assert jnp.allclose(out, ref, atol=5e-4, rtol=5e-4)

    # 2) multi-block + ragged tail: B=300 -> two 256-wide lane tiles (>=2
    #    parallel blocks for v7x); OOB tail handled by Pallas, no jnp.pad.
    x_big = jax.random.normal(kx2, (300, input_dim), dtype=jnp.float32)
    out2 = jax.block_until_ready(
        hnn_forward(x_big, *params, single_buffer_weights=sb))
    ref2 = hnn_reference(x_big, *params)
    assert out2.shape == (300, 1)
    assert jnp.allclose(out2, ref2, atol=5e-4, rtol=5e-4)

    # 3) bf16-at-rest weights -> bf16 MXU operands (f32 accumulate / f32 tanh);
    #    valid on v5e as well since only its VPU/EUP lack bf16.
    params_bf16 = (w1.astype(jnp.bfloat16), b1, w2.astype(jnp.bfloat16), b2,
                   w3.astype(jnp.bfloat16), b3)
    out3 = jax.block_until_ready(
        hnn_forward(x_big, *params_bf16, single_buffer_weights=sb))
    ref3 = hnn_reference(x_big, *params_bf16)
    assert out3.shape == (300, 1)
    assert jnp.allclose(out3, ref3, atol=2e-2, rtol=2e-2)

    print("KERNEL_OK")
</pallas_src>

<mosaic_0001>
module attributes {stable_mosaic.version = 11 : i64} {
  func.func @hnn_kernel(%arg0: i32, %arg1: memref<8x8xf32, #tpu.memory_space<vmem>>, %arg2: memref<32x8xf32, #tpu.memory_space<vmem>>, %arg3: memref<32x1xf32, #tpu.memory_space<vmem>>, %arg4: memref<32x32xf32, #tpu.memory_space<vmem>>, %arg5: memref<32x1xf32, #tpu.memory_space<vmem>>, %arg6: memref<1x32xf32, #tpu.memory_space<vmem>>, %arg7: memref<1xf32, #tpu.memory_space<smem>>, %arg8: memref<1x8xf32, #tpu.memory_space<vmem>>) attributes {dimension_semantics = [#tpu.dimension_semantics<parallel>], iteration_bounds = array<i64: 1>, scalar_prefetch = 0 : i64, scratch_operands = 0 : i64, tpu.core_type = #tpu.core_type<tc>, window_params = [{transform_indices = @transform_0, window_bounds = array<i64: 8, 8>}, {pipeline_mode = #tpu.pipeline_mode<synchronous>, transform_indices = @transform_1, window_bounds = array<i64: 32, 8>}, {pipeline_mode = #tpu.pipeline_mode<synchronous>, transform_indices = @transform_2, window_bounds = array<i64: 32, 1>}, {pipeline_mode = #tpu.pipeline_mode<synchronous>, transform_indices = @transform_3, window_bounds = array<i64: 32, 32>}, {pipeline_mode = #tpu.pipeline_mode<synchronous>, transform_indices = @transform_4, window_bounds = array<i64: 32, 1>}, {pipeline_mode = #tpu.pipeline_mode<synchronous>, transform_indices = @transform_5, window_bounds = array<i64: 1, 32>}, {transform_indices = @transform_6, window_bounds = array<i64: 1>}, {transform_indices = @transform_7, window_bounds = array<i64: 1, 8>}]} {
    %c0 = arith.constant 0 : index
    %c0_0 = arith.constant 0 : index
    %0 = vector.load %arg1[%c0, %c0_0] : memref<8x8xf32, #tpu.memory_space<vmem>>, vector<8x8xf32>
    %c0_1 = arith.constant 0 : index
    %c0_2 = arith.constant 0 : index
    %1 = vector.load %arg2[%c0_1, %c0_2] : memref<32x8xf32, #tpu.memory_space<vmem>>, vector<32x8xf32>
    %cst = arith.constant dense<0.000000e+00> : vector<32x8xf32>
    %2 = tpu.matmul %1, %0, %cst {dimension_numbers = #tpu.dot_dimension_numbers<[1], [0], [0], [1], [0, 0, 1, 1], [], []>} : vector<32x8xf32>, vector<8x8xf32>, vector<32x8xf32> -> vector<32x8xf32>
    %c0_3 = arith.constant 0 : index
    %c0_4 = arith.constant 0 : index
    %3 = vector.load %arg3[%c0_3, %c0_4] : memref<32x1xf32, #tpu.memory_space<vmem>>, vector<32x1xf32>
    %4 = vector.broadcast %3 : vector<32x1xf32> to vector<32x8xf32>
    %5 = arith.addf %2, %4 : vector<32x8xf32>
    %6 = math.tanh %5 : vector<32x8xf32>
    %c0_5 = arith.constant 0 : index
    %c0_6 = arith.constant 0 : index
    %7 = vector.load %arg4[%c0_5, %c0_6] : memref<32x32xf32, #tpu.memory_space<vmem>>, vector<32x32xf32>
    %cst_7 = arith.constant dense<0.000000e+00> : vector<32x8xf32>
    %8 = tpu.matmul %7, %6, %cst_7 {dimension_numbers = #tpu.dot_dimension_numbers<[1], [0], [0], [1], [0, 0, 1, 1], [], []>} : vector<32x32xf32>, vector<32x8xf32>, vector<32x8xf32> -> vector<32x8xf32>
    %c0_8 = arith.constant 0 : index
    %c0_9 = arith.constant 0 : index
    %9 = vector.load %arg5[%c0_8, %c0_9] : memref<32x1xf32, #tpu.memory_space<vmem>>, vector<32x1xf32>
    %10 = vector.broadcast %9 : vector<32x1xf32> to vector<32x8xf32>
    %11 = arith.addf %8, %10 : vector<32x8xf32>
    %12 = math.tanh %11 : vector<32x8xf32>
    %c0_10 = arith.constant 0 : index
    %c0_11 = arith.constant 0 : index
    %13 = vector.load %arg6[%c0_10, %c0_11] : memref<1x32xf32, #tpu.memory_space<vmem>>, vector<1x32xf32>
    %cst_12 = arith.constant dense<0.000000e+00> : vector<1x8xf32>
    %14 = tpu.matmul %13, %12, %cst_12 {dimension_numbers = #tpu.dot_dimension_numbers<[1], [0], [0], [1], [0, 0, 1, 1], [], []>} : vector<1x32xf32>, vector<32x8xf32>, vector<1x8xf32> -> vector<1x8xf32>
    %c0_13 = arith.constant 0 : index
    %15 = memref.load %arg7[%c0_13] : memref<1xf32, #tpu.memory_space<smem>>
    %16 = vector.broadcast %15 : f32 to vector<1x8xf32>
    %17 = arith.addf %14, %16 : vector<1x8xf32>
    %c0_14 = arith.constant 0 : index
    %c0_15 = arith.constant 0 : index
    %18 = vector.load %arg8[%c0_14, %c0_15] : memref<1x8xf32, #tpu.memory_space<vmem>>, vector<1x8xf32>
    tpu.vector_store %arg8[%c0_14, %c0_15], %17 {strides = array<i32>} : memref<1x8xf32, #tpu.memory_space<vmem>>, vector<1x8xf32>,
    return
  }
  func.func @transform_0(%arg0: i32) -> (i32, i32) {
    %c0_i32 = arith.constant 0 : i32
    %c0_i32_0 = arith.constant 0 : i32
    return %c0_i32, %arg0 : i32, i32
  }
  func.func @transform_1(%arg0: i32) -> (i32, i32) {
    %c0_i32 = arith.constant 0 : i32
    %c0_i32_0 = arith.constant 0 : i32
    %c0_i32_1 = arith.constant 0 : i32
    return %c0_i32, %c0_i32_0 : i32, i32
  }
  func.func @transform_2(%arg0: i32) -> (i32, i32) {
    %c0_i32 = arith.constant 0 : i32
    %c0_i32_0 = arith.constant 0 : i32
    %c0_i32_1 = arith.constant 0 : i32
    return %c0_i32, %c0_i32_0 : i32, i32
  }
  func.func @transform_3(%arg0: i32) -> (i32, i32) {
    %c0_i32 = arith.constant 0 : i32
    %c0_i32_0 = arith.constant 0 : i32
    %c0_i32_1 = arith.constant 0 : i32
    return %c0_i32, %c0_i32_0 : i32, i32
  }
  func.func @transform_4(%arg0: i32) -> (i32, i32) {
    %c0_i32 = arith.constant 0 : i32
    %c0_i32_0 = arith.constant 0 : i32
    %c0_i32_1 = arith.constant 0 : i32
    return %c0_i32, %c0_i32_0 : i32, i32
  }
  func.func @transform_5(%arg0: i32) -> (i32, i32) {
    %c0_i32 = arith.constant 0 : i32
    %c0_i32_0 = arith.constant 0 : i32
    %c0_i32_1 = arith.constant 0 : i32
    return %c0_i32, %c0_i32_0 : i32, i32
  }
  func.func @transform_6(%arg0: i32) -> i32 {
    %c0_i32 = arith.constant 0 : i32
    %c0_i32_0 = arith.constant 0 : i32
    return %c0_i32 : i32
  }
  func.func @transform_7(%arg0: i32) -> (i32, i32) {
    %c0_i32 = arith.constant 0 : i32
    %c0_i32_0 = arith.constant 0 : i32
    return %c0_i32, %arg0 : i32, i32
  }
}

module attributes {stable_mosaic.version = 11 : i64} {
  func.func @hnn_kernel(%arg0: i32, %arg1: memref<8x8xf32, #tpu.memory_space<vmem>>, %arg2: memref<32x8xf32, #tpu.memory_space<vmem>>, %arg3: memref<32x1xf32, #tpu.memory_space<vmem>>, %arg4: memref<32x32xf32, #tpu.memory_space<vmem>>, %arg5: memref<32x1xf32, #tpu.memory_space<vmem>>, %arg6: memref<1x32xf32, #tpu.memory_space<vmem>>, %arg7: memref<1xf32, #tpu.memory_space<smem>>, %arg8: memref<1x8xf32, #tpu.memory_space<vmem>>) attributes {dimension_semantics = [#tpu.dimension_semantics<parallel>], iteration_bounds = array<i64: 1>, scalar_prefetch = 0 : i64, scratch_operands = 0 : i64, tpu.core_type = #tpu.core_type<tc>, window_params = [{transform_indices = @transform_0, window_bounds = array<i64: 8, 8>}, {pipeline_mode = #tpu.pipeline_mode<synchronous>, transform_indices = @transform_1, window_bounds = array<i64: 32, 8>}, {pipeline_mode = #tpu.pipeline_mode<synchronous>, transform_indices = @transform_2, window_bounds = array<i64: 32, 1>}, {pipeline_mode = #tpu.pipeline_mode<synchronous>, transform_indices = @transform_3, window_bounds = array<i64: 32, 32>}, {pipeline_mode = #tpu.pipeline_mode<synchronous>, transform_indices = @transform_4, window_bounds = array<i64: 32, 1>}, {pipeline_mode = #tpu.pipeline_mode<synchronous>, transform_indices = @transform_5, window_bounds = array<i64: 1, 32>}, {transform_indices = @transform_6, window_bounds = array<i64: 1>}, {transform_indices = @transform_7, window_bounds = array<i64: 1, 8>}]} {
    %c0 = arith.constant 0 : index
    %c0_0 = arith.constant 0 : index
    %0 = vector.load %arg1[%c0, %c0_0] : memref<8x8xf32, #tpu.memory_space<vmem>>, vector<8x8xf32>
    %c0_1 = arith.constant 0 : index
    %c0_2 = arith.constant 0 : index
    %1 = vector.load %arg2[%c0_1, %c0_2] : memref<32x8xf32, #tpu.memory_space<vmem>>, vector<32x8xf32>
    %cst = arith.constant dense<0.000000e+00> : vector<32x8xf32>
    %2 = tpu.matmul %1, %0, %cst {dimension_numbers = #tpu.dot_dimension_numbers<[1], [0], [0], [1], [0, 0, 1, 1], [], []>} : vector<32x8xf32>, vector<8x8xf32>, vector<32x8xf32> -> vector<32x8xf32>
    %c0_3 = arith.constant 0 : index
    %c0_4 = arith.constant 0 : index
    %3 = vector.load %arg3[%c0_3, %c0_4] : memref<32x1xf32, #tpu.memory_space<vmem>>, vector<32x1xf32>
    %4 = vector.broadcast %3 : vector<32x1xf32> to vector<32x8xf32>
    %5 = arith.addf %2, %4 : vector<32x8xf32>
    %6 = math.tanh %5 : vector<32x8xf32>
    %c0_5 = arith.constant 0 : index
    %c0_6 = arith.constant 0 : index
    %7 = vector.load %arg4[%c0_5, %c0_6] : memref<32x32xf32, #tpu.memory_space<vmem>>, vector<32x32xf32>
    %cst_7 = arith.constant dense<0.000000e+00> : vector<32x8xf32>
    %8 = tpu.matmul %7, %6, %cst_7 {dimension_numbers = #tpu.dot_dimension_numbers<[1], [0], [0], [1], [0, 0, 1, 1], [], []>} : vector<32x32xf32>, vector<32x8xf32>, vector<32x8xf32> -> vector<32x8xf32>
    %c0_8 = arith.constant 0 : index
    %c0_9 = arith.constant 0 : index
    %9 = vector.load %arg5[%c0_8, %c0_9] : memref<32x1xf32, #tpu.memory_space<vmem>>, vector<32x1xf32>
    %10 = vector.broadcast %9 : vector<32x1xf32> to vector<32x8xf32>
    %11 = arith.addf %8, %10 : vector<32x8xf32>
    %12 = math.tanh %11 : vector<32x8xf32>
    %c0_10 = arith.constant 0 : index
    %c0_11 = arith.constant 0 : index
    %13 = vector.load %arg6[%c0_10, %c0_11] : memref<1x32xf32, #tpu.memory_space<vmem>>, vector<1x32xf32>
    %cst_12 = arith.constant dense<0.000000e+00> : vector<1x8xf32>
    %14 = tpu.matmul %13, %12, %cst_12 {dimension_numbers = #tpu.dot_dimension_numbers<[1], [0], [0], [1], [0, 0, 1, 1], [], []>} : vector<1x32xf32>, vector<32x8xf32>, vector<1x8xf32> -> vector<1x8xf32>
    %c0_13 = arith.constant 0 : index
    %15 = memref.load %arg7[%c0_13] : memref<1xf32, #tpu.memory_space<smem>>
    %16 = vector.broadcast %15 : f32 to vector<1x8xf32>
    %17 = arith.addf %14, %16 : vector<1x8xf32>
    %c0_14 = arith.constant 0 : index
    %c0_15 = arith.constant 0 : index
    %18 = vector.load %arg8[%c0_14, %c0_15] : memref<1x8xf32, #tpu.memory_space<vmem>>, vector<1x8xf32>
    tpu.vector_store %arg8[%c0_14, %c0_15], %17 {strides = array<i32>} : memref<1x8xf32, #tpu.memory_space<vmem>>, vector<1x8xf32>,
    return
  }
  func.func @transform_0(%arg0: i32) -> (i32, i32) {
    %c0_i32 = arith.constant 0 : i32
    %c0_i32_0 = arith.constant 0 : i32
    return %c0_i32, %arg0 : i32, i32
  }
  func.func @transform_1(%arg0: i32) -> (i32, i32) {
    %c0_i32 = arith.constant 0 : i32
    %c0_i32_0 = arith.constant 0 : i32
    %c0_i32_1 = arith.constant 0 : i32
    return %c0_i32, %c0_i32_0 : i32, i32
  }
  func.func @transform_2(%arg0: i32) -> (i32, i32) {
    %c0_i32 = arith.constant 0 : i32
    %c0_i32_0 = arith.constant 0 : i32
    %c0_i32_1 = arith.constant 0 : i32
    return %c0_i32, %c0_i32_0 : i32, i32
  }
  func.func @transform_3(%arg0: i32) -> (i32, i32) {
    %c0_i32 = arith.constant 0 : i32
    %c0_i32_0 = arith.constant 0 : i32
    %c0_i32_1 = arith.constant 0 : i32
    return %c0_i32, %c0_i32_0 : i32, i32
  }
  func.func @transform_4(%arg0: i32) -> (i32, i32) {
    %c0_i32 = arith.constant 0 : i32
    %c0_i32_0 = arith.constant 0 : i32
    %c0_i32_1 = arith.constant 0 : i32
    return %c0_i32, %c0_i32_0 : i32, i32
  }
  func.func @transform_5(%arg0: i32) -> (i32, i32) {
    %c0_i32 = arith.constant 0 : i32
    %c0_i32_0 = arith.constant 0 : i32
    %c0_i32_1 = arith.constant 0 : i32
    return %c0_i32, %c0_i32_0 : i32, i32
  }
  func.func @transform_6(%arg0: i32) -> i32 {
    %c0_i32 = arith.constant 0 : i32
    %c0_i32_0 = arith.constant 0 : i32
    return %c0_i32 : i32
  }
  func.func @transform_7(%arg0: i32) -> (i32, i32) {
    %c0_i32 = arith.constant 0 : i32
    %c0_i32_0 = arith.constant 0 : i32
    return %c0_i32, %arg0 : i32, i32
  }
}

</mosaic_0001>

<bundles_post_ra>
// kernel: hnn_forward.1
= control target key start
LH: loop header
LB: loop body
LE: loop exit
PB: predicated region body
PF: predicated region fallthrough
CT: control target
= control target key end

     0   :  { %vm57_vm0 = vcmask 64512   ;;  %v485_v5 = vmov 0   ;;  %s598_s0 = inlined_call_operand.vmem [shape: f32[8,8], index: 0, kind: input, shape index: {}]   ;;  %s599_s1 = inlined_call_operand.vmem [shape: f32[32,8], index: 1, kind: input, shape index: {}]   ;;  %s600_s2 = inlined_call_operand.vmem [shape: f32[32,1], index: 2, kind: input, shape index: {}]   ;;  %s601_s3 = inlined_call_operand.vmem [shape: f32[32,32], index: 3, kind: input, shape index: {}]   ;;  %s602_s4 = inlined_call_operand.vmem [shape: f32[32,1], index: 4, kind: input, shape index: {}]   ;;  %s603_s5 = inlined_call_operand.vmem [shape: f32[1,32], index: 5, kind: input, shape index: {}]   ;;  %s604_s6 = inlined_call_operand.<no memory space> [shape: f32[1], index: 6, kind: input, shape index: {}]   ;;  %s605_s7 = inlined_call_operand.hbm [shape: f32[1,8], index: 7, kind: output, shape index: {}]  }
   0x1   :  { %v28_v0 = vld [vmem:[%s598_s0] sm:$0xff]  ;;  %v30_v2 = vld [vmem:[%s599_s1 + $0x8] sm:$0xff]  ;;  %v31_v3 = vld [vmem:[%s599_s1 + $0x10] sm:$0xff]  ;;  %445 = vset.pattern.permute.xlu0 %v485_v5  ;;  %446 = vset.pattern.permute.xlu1 %v485_v5 }
   0x2   :  { %v29_v1 = vld [vmem:[%s599_s1] sm:$0xff]  ;;  %408 = vmatprep.subr.mxu0 %v28_v0  ;;  %v36_v4 = vld [vmem:[%s600_s2 + $0x18] sm:$0xff]  ;;  %v34_v6 = vld [vmem:[%s600_s2 + $0x8] sm:$0xff] }
   0x3   :  { %410 = vmatprep.mubr.msk.f32.mxu0 %vm57_vm0, %v29_v1  ;;  %409 = vmatpush3.msra.mxu0 %v28_v0  ;;  %v32_v7 = vld [vmem:[%s599_s1 + $0x18] sm:$0xff]  ;;  %v35_v8 = vld [vmem:[%s600_s2 + $0x10] sm:$0xff] }
   0x4   :  { %411 = vmatmul.mubr.msk.f32.vlgmr.msra.gmra.mxu0 %vm57_vm0, %v30_v2  ;;  %54 = vperm.xlu0 %445, %v36_v4  }
   0x5   :  { %413 = vmatprep.mubr.msk.f32.mxu0 %vm57_vm0, %v31_v3 }
   0x6   :  { %13 = vsyncpa [#allocation4], 0  ;;  %44 = vperm.xlu1 %446, %v34_v6   ;;  %v33_v9 = vld [vmem:[%s600_s2] sm:$0xff]  ;;  %v166_v10 = vld [vmem:[%s602_s4 + $0x18] sm:$0xff]  ;;  %vm187_vm1 = vcmask 261120   ;;  %v486_v34 = vmov 0.0   ;;  %v291_v52 = vstv %s604_s6 }
   0x7   :  { %v165_v11 = vld [vmem:[%s602_s4 + $0x10] sm:$0xff]  ;;  %v164_v12 = vld [vmem:[%s602_s4 + $0x8] sm:$0xff]  ;;  %v163_v13 = vld [vmem:[%s602_s4] sm:$0xff]  ;;  %430 = vmatprep.subr.mxu0 %v486_v34  ;;  %vm487_vm2 = vmmov 0   ;;  %s488_s0 = smov [#allocation3]   ;;  %vm365_vm3 = vcmask 57344  }
   0x8   :  { %414 = vmatmul.mubr.msk.f32.gmra.mxu0 %vm57_vm0, %v32_v7  ;;  %49 = vperm.xlu0 %445, %v35_v8   ;;  %v159_v14 = vld [vmem:[%s601_s3] sm:$0xff]  ;;  %v160_v31 = vld [vmem:[%s601_s3 + $0x8] sm:$0xff]  ;;  %v161_v32 = vld [vmem:[%s601_s3 + $0x10] sm:$0xff]  ;;  %s373_s11 = sshll.u32 %s488_s0, 4  ;;  %s374_s11 = int_to_ptr.vmem [resolvable:$true] %s373_s11 }
   0x9   :  { %424 = vmatprep.mubr.msk.f32.mxu1 %vm187_vm1, %v159_v14  ;;  %v162_v33 = vld [vmem:[%s601_s3 + $0x18] sm:$0xff]  ;;  %438 = vmatprep.mubr.msk.f32.mxu0 %vm487_vm2, %v486_v34  ;;  %v289_v50 = vld [vmem:[%s603_s5] sm:$0x1]  ;;  %s463_s12 = scalar_lea.vmem %s374_s11, 16  ;;  %s467_s5 = scalar_lea.vmem %s374_s11, 32 }
   0xa   :  { %39 = vperm.xlu1 %446, %v33_v9   ;;  %p464_p0 = scmp.ne.s32.totalorder %s374_s11, %s463_s12  ;;  %p468_p1 = scmp.lt.s32.totalorder %s374_s11, %s374_s11 }
   0xb   :  { %p469_p2 = scmp.lt.s32.totalorder %s467_s5, %s463_s12 }
   0xc   :  { %184 = vperm.xlu0 %445, %v166_v10  }
   0xd   :  { %p470_p3 = por %p469_p2, %p468_p1 }
   0xe   :  { %179 = vperm.xlu1 %446, %v165_v11  }
   0xf   :  { %p471_p4 = pnand %p470_p3, %p464_p0 }
  0x10   :  { %174 = vperm.xlu0 %445, %v164_v12  }
  0x12   :  { %169 = vperm.xlu1 %446, %v163_v13  }
  0x7f   :  { %v55_v15 = vpop.permute.xlu0 %54 }
  0x81   :  { %v45_v17 = vpop.permute.xlu1 %44 }
  0x83   :  { %v50_v21 = vpop.permute.xlu0 %49 }
  0x85   :  { %v40_v25 = vpop.permute.xlu1 %39 }
  0x87   :  { %v185_v35 = vpop.permute.xlu0 %184 }
  0x89   :  { %v180_v37 = vpop.permute.xlu1 %179 }
  0x8b   :  { %v175_v41 = vpop.permute.xlu0 %174 }
  0x8d   :  { %v170_v45 = vpop.permute.xlu1 %169 }
  0xc4   :  { %v412_v16 = vpop.f32.mrf.mxu0 }
  0xc5   :  { %v142_v23 = vadd.f32 %v412_v16, %v45_v17 }
  0xc6   :  { %v136_v18 = vpop.f32.mrf.mxu0 }
  0xc7   :  { %v137_v26 = vadd.f32 %v136_v18, %v40_v25 }
  0xc8   :  { %v415_v19 = vpop.f32.mrf.mxu0 }
  0xc9   :  { %v152_v20 = vadd.f32 %v415_v19, %v55_v15 }
  0xca   :  { %v146_v22 = vpop.f32.mrf.mxu0 }
  0xcb   :  { %447 = vtanh.f32 %v152_v20  ;;  %v147_v24 = vadd.f32 %v146_v22, %v50_v21 }
  0xcd   :  { %449 = vtanh.f32 %v147_v24 }
  0xce   :  { %451 = vtanh.f32 %v142_v23 }
  0xcf   :  { %453 = vtanh.f32 %v137_v26 }
  0xd8   :  { %v448_v27 = vpop.eup %447 }
  0xd9   :  { %416 = vmatprep.subr.mxu1 %v448_v27 }
  0xda   :  { %v450_v28 = vpop.eup %449  ;;  %417 = vmatpush3.msra.mxu1 %v448_v27 }
  0xdb   :  { %418 = vmatprep.subr.mxu1 %v450_v28  ;;  %v452_v29 = vpop.eup %451 }
  0xdc   :  { %419 = vmatpush3.msra.mxu1 %v450_v28  ;;  %v454_v30 = vpop.eup %453 }
  0xdd   :  { %420 = vmatprep.subr.mxu1 %v452_v29 }
  0xde   :  { %421 = vmatpush3.msra.mxu1 %v452_v29 }
  0xdf   :  { %422 = vmatprep.subr.mxu1 %v454_v30 }
  0xe0   :  { %423 = vmatpush3.msra.mxu1 %v454_v30 }
  0xe1   :  { %425 = vmatmul.mubr.msk.f32.vlgmr.msra.gmra.mxu1 %vm187_vm1, %v160_v31 }
  0xe2   :  { %427 = vmatprep.mubr.msk.f32.mxu1 %vm187_vm1, %v161_v32 }
  0xe5   :  { %428 = vmatmul.mubr.msk.f32.gmra.mxu1 %vm187_vm1, %v162_v33 }
 0x1a1   :  { %v426_v36 = vpop.f32.mrf.mxu1 }
 0x1a2   :  { %v272_v43 = vadd.f32 %v426_v36, %v175_v41 }
 0x1a3   :  { %v266_v38 = vpop.f32.mrf.mxu1 }
 0x1a4   :  { %v267_v46 = vadd.f32 %v266_v38, %v170_v45 }
 0x1a5   :  { %v429_v39 = vpop.f32.mrf.mxu1 }
 0x1a6   :  { %v282_v40 = vadd.f32 %v429_v39, %v185_v35 }
 0x1a7   :  { %v276_v42 = vpop.f32.mrf.mxu1 }
 0x1a8   :  { %455 = vtanh.f32 %v282_v40  ;;  %v277_v44 = vadd.f32 %v276_v42, %v180_v37 }
 0x1aa   :  { %457 = vtanh.f32 %v277_v44 }
 0x1ab   :  { %459 = vtanh.f32 %v272_v43 }
 0x1ac   :  { %461 = vtanh.f32 %v267_v46 }
 0x1b5   :  { %v456_v47 = vpop.eup %455 }
 0x1b6   :  { %431 = vmatpush3.msra.mxu0 %v456_v47 }
 0x1b7   :  { %v458_v48 = vpop.eup %457  ;;  %432 = vmatprep.subr.mxu0 %v486_v34 }
 0x1b8   :  { %433 = vmatpush3.msra.mxu0 %v458_v48  ;;  %v460_v49 = vpop.eup %459 }
 0x1b9   :  { %434 = vmatprep.subr.mxu0 %v486_v34  ;;  %v462_v51 = vpop.eup %461 }
 0x1ba   :  { %435 = vmatpush3.msra.mxu0 %v460_v49 }
 0x1bb   :  { %436 = vmatprep.subr.mxu0 %v486_v34 }
 0x1bc   :  { %437 = vmatpush3.msra.mxu0 %v462_v51 }
 0x1bd   :  { %439 = vmatmul.mubr.msk.f32.vlgmr.msra.gmra.mxu0 %vm187_vm1, %v289_v50 }
 0x27d   :  { %v361_v53 = vpop.f32.mrf.mxu0 }
 0x27e   :  { %v362_v54 = vadd.f32 %v361_v53, %v291_v52 }
 0x27f   :  { %v440_v55 = vpop.f32.mrf.mxu0 }
 0x280   :  { %366 = vst.msk [vmem:[#allocation3] sm:$0x1] %vm365_vm3, %v362_v54 }
 0x281   :  { %474 = shalt.err (!%p471_p4)
}
 0x282   :  { %376 = dma.vmem_to_hbm [thread:$0]  %s374_s11, 16, %s605_s7, [#allocation4]  }
 0x283   :  { %483 = dma.done.wait [#allocation4], 16  }
 0x284   :  { %484 = vsyncadd [#allocation4], 4294967280 }
 0x285   :  { %380 = vsyncpa [#allocation4], 1 }

// kernel: hnn_forward.1
= control target key start
LH: loop header
LB: loop body
LE: loop exit
PB: predicated region body
PF: predicated region fallthrough
CT: control target
= control target key end

     0   :  { %vm57_vm0 = vcmask 64512   ;;  %v485_v5 = vmov 0   ;;  %s598_s0 = inlined_call_operand.vmem [shape: f32[8,8], index: 0, kind: input, shape index: {}]   ;;  %s599_s1 = inlined_call_operand.vmem [shape: f32[32,8], index: 1, kind: input, shape index: {}]   ;;  %s600_s2 = inlined_call_operand.vmem [shape: f32[32,1], index: 2, kind: input, shape index: {}]   ;;  %s601_s3 = inlined_call_operand.vmem [shape: f32[32,32], index: 3, kind: input, shape index: {}]   ;;  %s602_s4 = inlined_call_operand.vmem [shape: f32[32,1], index: 4, kind: input, shape index: {}]   ;;  %s603_s5 = inlined_call_operand.vmem [shape: f32[1,32], index: 5, kind: input, shape index: {}]   ;;  %s604_s6 = inlined_call_operand.<no memory space> [shape: f32[1], index: 6, kind: input, shape index: {}]   ;;  %s605_s7 = inlined_call_operand.hbm [shape: f32[1,8], index: 7, kind: output, shape index: {}]  }
   0x1   :  { %v28_v0 = vld [vmem:[%s598_s0] sm:$0xff]  ;;  %v30_v2 = vld [vmem:[%s599_s1 + $0x8] sm:$0xff]  ;;  %v31_v3 = vld [vmem:[%s599_s1 + $0x10] sm:$0xff]  ;;  %445 = vset.pattern.permute.xlu0 %v485_v5  ;;  %446 = vset.pattern.permute.xlu1 %v485_v5 }
   0x2   :  { %v29_v1 = vld [vmem:[%s599_s1] sm:$0xff]  ;;  %408 = vmatprep.subr.mxu0 %v28_v0  ;;  %v36_v4 = vld [vmem:[%s600_s2 + $0x18] sm:$0xff]  ;;  %v34_v6 = vld [vmem:[%s600_s2 + $0x8] sm:$0xff] }
   0x3   :  { %410 = vmatprep.mubr.msk.f32.mxu0 %vm57_vm0, %v29_v1  ;;  %409 = vmatpush3.msra.mxu0 %v28_v0  ;;  %v32_v7 = vld [vmem:[%s599_s1 + $0x18] sm:$0xff]  ;;  %v35_v8 = vld [vmem:[%s600_s2 + $0x10] sm:$0xff] }
   0x4   :  { %411 = vmatmul.mubr.msk.f32.vlgmr.msra.gmra.mxu0 %vm57_vm0, %v30_v2  ;;  %54 = vperm.xlu0 %445, %v36_v4  }
   0x5   :  { %413 = vmatprep.mubr.msk.f32.mxu0 %vm57_vm0, %v31_v3 }
   0x6   :  { %13 = vsyncpa [#allocation4], 0  ;;  %44 = vperm.xlu1 %446, %v34_v6   ;;  %v33_v9 = vld [vmem:[%s600_s2] sm:$0xff]  ;;  %v166_v10 = vld [vmem:[%s602_s4 + $0x18] sm:$0xff]  ;;  %vm187_vm1 = vcmask 261120   ;;  %v486_v34 = vmov 0.0   ;;  %v291_v52 = vstv %s604_s6 }
   0x7   :  { %v165_v11 = vld [vmem:[%s602_s4 + $0x10] sm:$0xff]  ;;  %v164_v12 = vld [vmem:[%s602_s4 + $0x8] sm:$0xff]  ;;  %v163_v13 = vld [vmem:[%s602_s4] sm:$0xff]  ;;  %430 = vmatprep.subr.mxu0 %v486_v34  ;;  %vm487_vm2 = vmmov 0   ;;  %s488_s0 = smov [#allocation3]   ;;  %vm365_vm3 = vcmask 57344  }
   0x8   :  { %414 = vmatmul.mubr.msk.f32.gmra.mxu0 %vm57_vm0, %v32_v7  ;;  %49 = vperm.xlu0 %445, %v35_v8   ;;  %v159_v14 = vld [vmem:[%s601_s3] sm:$0xff]  ;;  %v160_v31 = vld [vmem:[%s601_s3 + $0x8] sm:$0xff]  ;;  %v161_v32 = vld [vmem:[%s601_s3 + $0x10] sm:$0xff]  ;;  %s373_s11 = sshll.u32 %s488_s0, 4  ;;  %s374_s11 = int_to_ptr.vmem [resolvable:$true] %s373_s11 }
   0x9   :  { %424 = vmatprep.mubr.msk.f32.mxu1 %vm187_vm1, %v159_v14  ;;  %v162_v33 = vld [vmem:[%s601_s3 + $0x18] sm:$0xff]  ;;  %438 = vmatprep.mubr.msk.f32.mxu0 %vm487_vm2, %v486_v34  ;;  %v289_v50 = vld [vmem:[%s603_s5] sm:$0x1]  ;;  %s463_s12 = scalar_lea.vmem %s374_s11, 16  ;;  %s467_s5 = scalar_lea.vmem %s374_s11, 32 }
   0xa   :  { %39 = vperm.xlu1 %446, %v33_v9   ;;  %p464_p0 = scmp.ne.s32.totalorder %s374_s11, %s463_s12  ;;  %p468_p1 = scmp.lt.s32.totalorder %s374_s11, %s374_s11 }
   0xb   :  { %p469_p2 = scmp.lt.s32.totalorder %s467_s5, %s463_s12 }
   0xc   :  { %184 = vperm.xlu0 %445, %v166_v10  }
   0xd   :  { %p470_p3 = por %p469_p2, %p468_p1 }
   0xe   :  { %179 = vperm.xlu1 %446, %v165_v11  }
   0xf   :  { %p471_p4 = pnand %p470_p3, %p464_p0 }
  0x10   :  { %174 = vperm.xlu0 %445, %v164_v12  }
  0x12   :  { %169 = vperm.xlu1 %446, %v163_v13  }
  0x7f   :  { %v55_v15 = vpop.permute.xlu0 %54 }
  0x81   :  { %v45_v17 = vpop.permute.xlu1 %44 }
  0x83   :  { %v50_v21 = vpop.permute.xlu0 %49 }
  0x85   :  { %v40_v25 = vpop.permute.xlu1 %39 }
  0x87   :  { %v185_v35 = vpop.permute.xlu0 %184 }
  0x89   :  { %v180_v37 = vpop.permute.xlu1 %179 }
  0x8b   :  { %v175_v41 = vpop.permute.xlu0 %174 }
  0x8d   :  { %v170_v45 = vpop.permute.xlu1 %169 }
  0xc4   :  { %v412_v16 = vpop.f32.mrf.mxu0 }
  0xc5   :  { %v142_v23 = vadd.f32 %v412_v16, %v45_v17 }
  0xc6   :  { %v136_v18 = vpop.f32.mrf.mxu0 }
  0xc7   :  { %v137_v26 = vadd.f32 %v136_v18, %v40_v25 }
  0xc8   :  { %v415_v19 = vpop.f32.mrf.mxu0 }
  0xc9   :  { %v152_v20 = vadd.f32 %v415_v19, %v55_v15 }
  0xca   :  { %v146_v22 = vpop.f32.mrf.mxu0 }
  0xcb   :  { %447 = vtanh.f32 %v152_v20  ;;  %v147_v24 = vadd.f32 %v146_v22, %v50_v21 }
  0xcd   :  { %449 = vtanh.f32 %v147_v24 }
  0xce   :  { %451 = vtanh.f32 %v142_v23 }
  0xcf   :  { %453 = vtanh.f32 %v137_v26 }
  0xd8   :  { %v448_v27 = vpop.eup %447 }
  0xd9   :  { %416 = vmatprep.subr.mxu1 %v448_v27 }
  0xda   :  { %v450_v28 = vpop.eup %449  ;;  %417 = vmatpush3.msra.mxu1 %v448_v27 }
  0xdb   :  { %418 = vmatprep.subr.mxu1 %v450_v28  ;;  %v452_v29 = vpop.eup %451 }
  0xdc   :  { %419 = vmatpush3.msra.mxu1 %v450_v28  ;;  %v454_v30 = vpop.eup %453 }
  0xdd   :  { %420 = vmatprep.subr.mxu1 %v452_v29 }
  0xde   :  { %421 = vmatpush3.msra.mxu1 %v452_v29 }
  0xdf   :  { %422 = vmatprep.subr.mxu1 %v454_v30 }
  0xe0   :  { %423 = vmatpush3.msra.mxu1 %v454_v30 }
  0xe1   :  { %425 = vmatmul.mubr.msk.f32.vlgmr.msra.gmra.mxu1 %vm187_vm1, %v160_v31 }
  0xe2   :  { %427 = vmatprep.mubr.msk.f32.mxu1 %vm187_vm1, %v161_v32 }
  0xe5   :  { %428 = vmatmul.mubr.msk.f32.gmra.mxu1 %vm187_vm1, %v162_v33 }
 0x1a1   :  { %v426_v36 = vpop.f32.mrf.mxu1 }
 0x1a2   :  { %v272_v43 = vadd.f32 %v426_v36, %v175_v41 }
 0x1a3   :  { %v266_v38 = vpop.f32.mrf.mxu1 }
 0x1a4   :  { %v267_v46 = vadd.f32 %v266_v38, %v170_v45 }
 0x1a5   :  { %v429_v39 = vpop.f32.mrf.mxu1 }
 0x1a6   :  { %v282_v40 = vadd.f32 %v429_v39, %v185_v35 }
 0x1a7   :  { %v276_v42 = vpop.f32.mrf.mxu1 }
 0x1a8   :  { %455 = vtanh.f32 %v282_v40  ;;  %v277_v44 = vadd.f32 %v276_v42, %v180_v37 }
 0x1aa   :  { %457 = vtanh.f32 %v277_v44 }
 0x1ab   :  { %459 = vtanh.f32 %v272_v43 }
 0x1ac   :  { %461 = vtanh.f32 %v267_v46 }
 0x1b5   :  { %v456_v47 = vpop.eup %455 }
 0x1b6   :  { %431 = vmatpush3.msra.mxu0 %v456_v47 }
 0x1b7   :  { %v458_v48 = vpop.eup %457  ;;  %432 = vmatprep.subr.mxu0 %v486_v34 }
 0x1b8   :  { %433 = vmatpush3.msra.mxu0 %v458_v48  ;;  %v460_v49 = vpop.eup %459 }
 0x1b9   :  { %434 = vmatprep.subr.mxu0 %v486_v34  ;;  %v462_v51 = vpop.eup %461 }
 0x1ba   :  { %435 = vmatpush3.msra.mxu0 %v460_v49 }
 0x1bb   :  { %436 = vmatprep.subr.mxu0 %v486_v34 }
 0x1bc   :  { %437 = vmatpush3.msra.mxu0 %v462_v51 }
 0x1bd   :  { %439 = vmatmul.mubr.msk.f32.vlgmr.msra.gmra.mxu0 %vm187_vm1, %v289_v50 }
 0x27d   :  { %v361_v53 = vpop.f32.mrf.mxu0 }
 0x27e   :  { %v362_v54 = vadd.f32 %v361_v53, %v291_v52 }
 0x27f   :  { %v440_v55 = vpop.f32.mrf.mxu0 }
 0x280   :  { %366 = vst.msk [vmem:[#allocation3] sm:$0x1] %vm365_vm3, %v362_v54 }
 0x281   :  { %474 = shalt.err (!%p471_p4)
}
 0x282   :  { %376 = dma.vmem_to_hbm [thread:$0]  %s374_s11, 16, %s605_s7, [#allocation4]  }
 0x283   :  { %483 = dma.done.wait [#allocation4], 16  }
 0x284   :  { %484 = vsyncadd [#allocation4], 4294967280 }
 0x285   :  { %380 = vsyncpa [#allocation4], 1 }

</bundles_post_ra>
